<compile_context>
chip_gen: v5e
topology: v5e:2x2
jax: 0.10.0
libtpu: 0.0.40
codegen_flags: <defaults>
</compile_context>

<pallas_src>
import functools

import jax
import jax.numpy as jnp
from jax.experimental import pallas as pl
from jax.experimental.pallas import tpu as pltpu

HIDDEN = 128   # fixed by the module definition (nn.Linear(input_dim, 128), ...)
LANE = 128     # TPU lane width
SUBLANE = 8    # TPU sublane width


def _round_up(x, m):
    return ((x + m - 1) // m) * m


# ---------------------------------------------------------------------------
# Kernel: one batch tile of the whole PPO forward.
#   base : h1 = relu(x @ W1 + b1); h2 = relu(h1 @ W2 + b2)
#   heads: out = h2 @ W_heads + b_heads   (logits and value fused, lane-padded)
# Weights arrive in bf16 (MXU operands); accumulation and elementwise math f32.
# ---------------------------------------------------------------------------
def ppo_fused_kernel(x_ref,
                     w1_ref, b1_ref,
                     w2_ref, b2_ref,
                     wh_ref, bh_ref,
                     out_ref):
    mxu_dtype = w1_ref.dtype

    x = x_ref[...].astype(mxu_dtype)

    h1 = jnp.dot(x, w1_ref[...], preferred_element_type=jnp.float32) + b1_ref[...]
    h1 = jnp.maximum(h1, 0.0).astype(mxu_dtype)

    h2 = jnp.dot(h1, w2_ref[...], preferred_element_type=jnp.float32) + b2_ref[...]
    h2 = jnp.maximum(h2, 0.0).astype(mxu_dtype)

    heads = jnp.dot(h2, wh_ref[...], preferred_element_type=jnp.float32) + bh_ref[...]
    out_ref[...] = heads.astype(out_ref.dtype)


# ---------------------------------------------------------------------------
# Parameter preparation (run once per parameter update, NOT per forward call):
#   * fuse logits/value heads into one lane-padded [128, H_pad] weight + bias
#   * cast matmul weights to the MXU operand dtype (bf16 by default)
# ---------------------------------------------------------------------------
def prepare_params(params, *, mxu_dtype=jnp.bfloat16):
    A = params["wl"].shape[1]
    H_pad = _round_up(A + 1, LANE)

    wh = jnp.zeros((HIDDEN, H_pad), jnp.float32)
    wh = wh.at[:, :A].set(params["wl"]).at[:, A:A + 1].set(params["wv"])
    bh = jnp.zeros((1, H_pad), jnp.float32)
    bh = bh.at[:, :A].set(params["bl"]).at[:, A:A + 1].set(params["bv"])

    return dict(
        w1=params["w1"].astype(mxu_dtype),
        b1=params["b1"].astype(jnp.float32),
        w2=params["w2"].astype(mxu_dtype),
        b2=params["b2"].astype(jnp.float32),
        wh=wh.astype(mxu_dtype),
        bh=bh,
    )


@functools.partial(jax.jit, static_argnames=("num_actions", "tb_max"))
def ppo_forward(state, prep, *, num_actions, tb_max=512):
    """Batch-tiled Pallas call; returns (logits [B,A], value [B,1])."""
    B, D = state.shape
    A = num_actions
    H_pad = prep["wh"].shape[1]

    # Batch tile: multiple of the sublane width, capped at tb_max.  Partial
    # last tile is handled by Pallas (grid = cdiv), no wrapper padding.
    TB = min(tb_max, _round_up(B, SUBLANE))
    grid = (pl.cdiv(B, TB),)
    const2d = lambda i: (0, 0)   # weights/biases: same block every grid step

    out = pl.pallas_call(
        ppo_fused_kernel,
        out_shape=jax.ShapeDtypeStruct((B, H_pad), jnp.bfloat16),
        grid=grid,
        in_specs=[
            pl.BlockSpec((TB, D), lambda i: (i, 0)),       # x (batch-tiled, unpadded D)
            pl.BlockSpec((D, HIDDEN), const2d),            # w1 (bf16, resident)
            pl.BlockSpec((1, HIDDEN), const2d),            # b1 (f32)
            pl.BlockSpec((HIDDEN, HIDDEN), const2d),       # w2 (bf16)
            pl.BlockSpec((1, HIDDEN), const2d),            # b2 (f32)
            pl.BlockSpec((HIDDEN, H_pad), const2d),        # fused head W (bf16)
            pl.BlockSpec((1, H_pad), const2d),             # fused head b (f32)
        ],
        out_specs=pl.BlockSpec((TB, H_pad), lambda i: (i, 0)),
        compiler_params=pltpu.CompilerParams(
            dimension_semantics=("parallel",)),            # megacore on v7x
    )(
        state,
        prep["w1"], prep["b1"],
        prep["w2"], prep["b2"],
        prep["wh"], prep["bh"],
    )

    logits = out[:, :A].astype(state.dtype)
    value = out[:, A:A + 1].astype(state.dtype)
    return logits, value


# ---------------------------------------------------------------------------
# Init + references
# ---------------------------------------------------------------------------
def init_params(key, input_dim, output_dim):
    """Deterministic init mimicking nn.Linear's U(-1/sqrt(fan_in), 1/sqrt(fan_in)).

    Weights are stored [in_features, out_features] (transpose of nn.Linear),
    biases as [1, out].
    """
    def linear(key, fan_in, fan_out):
        kw, kb = jax.random.split(key)
        bound = 1.0 / jnp.sqrt(jnp.float32(fan_in))
        w = jax.random.uniform(kw, (fan_in, fan_out), jnp.float32, -bound, bound)
        b = jax.random.uniform(kb, (1, fan_out), jnp.float32, -bound, bound)
        return w, b

    k1, k2, k3, k4 = jax.random.split(key, 4)
    w1, b1 = linear(k1, input_dim, HIDDEN)
    w2, b2 = linear(k2, HIDDEN, HIDDEN)
    wl, bl = linear(k3, HIDDEN, output_dim)
    wv, bv = linear(k4, HIDDEN, 1)
    return dict(w1=w1, b1=b1, w2=w2, b2=b2, wl=wl, bl=bl, wv=wv, bv=bv)


def ppo_forward_ref(state, params):
    """Pure-f32 reference (same math as the PyTorch module)."""
    h1 = jnp.maximum(state @ params["w1"] + params["b1"], 0.0)
    h2 = jnp.maximum(h1 @ params["w2"] + params["b2"], 0.0)
    logits = h2 @ params["wl"] + params["bl"]
    value = h2 @ params["wv"] + params["bv"]
    return logits, value


def ppo_forward_ref_mxu(state, prep, num_actions):
    """Reference matching the kernel's mixed precision (bf16 operands, f32 acc)."""
    dt = prep["w1"].dtype
    h1 = jnp.dot(state.astype(dt), prep["w1"],
                 preferred_element_type=jnp.float32) + prep["b1"]
    h1 = jnp.maximum(h1, 0.0)
    h2 = jnp.dot(h1.astype(dt), prep["w2"],
                 preferred_element_type=jnp.float32) + prep["b2"]
    h2 = jnp.maximum(h2, 0.0)
    heads = jnp.dot(h2.astype(dt), prep["wh"],
                    preferred_element_type=jnp.float32) + prep["bh"]
    return heads[:, :num_actions], heads[:, num_actions:num_actions + 1]


if __name__ == "__main__":
    key = jax.random.PRNGKey(0)
    k_param, k_state = jax.random.split(key)

    batch = 8
    input_dim = 32
    output_dim = 8

    params = init_params(k_param, input_dim, output_dim)
    prep = prepare_params(params)                      # fused heads, bf16 weights
    state = jax.random.normal(k_state, (batch, input_dim), jnp.float32)

    logits, value = ppo_forward(state, prep, num_actions=output_dim)
    jax.block_until_ready((logits, value))

    assert logits.shape == (batch, output_dim)
    assert value.shape == (batch, 1)

    # Check against the precision-matched reference (tight) and the pure-f32
    # reference (loose, since MXU operands + output are bf16).
    ml, mv = ppo_forward_ref_mxu(state, prep, output_dim)
    assert jnp.allclose(logits, ml, atol=2e-2, rtol=2e-2)
    assert jnp.allclose(value, mv, atol=2e-2, rtol=2e-2)
    rl, rv = ppo_forward_ref(state, params)
    assert jnp.allclose(logits, rl, atol=5e-2, rtol=5e-2)
    assert jnp.allclose(value, rv, atol=5e-2, rtol=5e-2)

    # Exercise the batch-tiled path (B > TB, B not a multiple of TB or 8).
    big_B = 2500
    big_state = jax.random.normal(jax.random.PRNGKey(1), (big_B, input_dim),
                                  jnp.float32)
    big_logits, big_value = ppo_forward(big_state, prep,
                                        num_actions=output_dim, tb_max=512)
    jax.block_until_ready((big_logits, big_value))

    assert big_logits.shape == (big_B, output_dim)
    assert big_value.shape == (big_B, 1)
    bml, bmv = ppo_forward_ref_mxu(big_state, prep, output_dim)
    assert jnp.allclose(big_logits, bml, atol=2e-2, rtol=2e-2)
    assert jnp.allclose(big_value, bmv, atol=2e-2, rtol=2e-2)
    brl, brv = ppo_forward_ref(big_state, params)
    assert jnp.allclose(big_logits, brl, atol=5e-2, rtol=5e-2)
    assert jnp.allclose(big_value, brv, atol=5e-2, rtol=5e-2)

    print("KERNEL_OK")
</pallas_src>

<mosaic_0001>
module attributes {stable_mosaic.version = 11 : i64} {
  func.func @ppo_fused_kernel(%arg0: i32, %arg1: memref<8x32xf32, #tpu.memory_space<vmem>>, %arg2: memref<32x128xbf16, #tpu.memory_space<vmem>>, %arg3: memref<1x128xf32, #tpu.memory_space<vmem>>, %arg4: memref<128x128xbf16, #tpu.memory_space<vmem>>, %arg5: memref<1x128xf32, #tpu.memory_space<vmem>>, %arg6: memref<128x128xbf16, #tpu.memory_space<vmem>>, %arg7: memref<1x128xf32, #tpu.memory_space<vmem>>, %arg8: memref<8x128xbf16, #tpu.memory_space<vmem>>) attributes {dimension_semantics = [#tpu.dimension_semantics<parallel>], iteration_bounds = array<i64: 1>, scalar_prefetch = 0 : i64, scratch_operands = 0 : i64, tpu.core_type = #tpu.core_type<tc>, window_params = [{transform_indices = @transform_0, window_bounds = array<i64: 8, 32>}, {pipeline_mode = #tpu.pipeline_mode<synchronous>, transform_indices = @transform_1, window_bounds = array<i64: 32, 128>}, {pipeline_mode = #tpu.pipeline_mode<synchronous>, transform_indices = @transform_2, window_bounds = array<i64: 1, 128>}, {pipeline_mode = #tpu.pipeline_mode<synchronous>, transform_indices = @transform_3, window_bounds = array<i64: 128, 128>}, {pipeline_mode = #tpu.pipeline_mode<synchronous>, transform_indices = @transform_4, window_bounds = array<i64: 1, 128>}, {pipeline_mode = #tpu.pipeline_mode<synchronous>, transform_indices = @transform_5, window_bounds = array<i64: 128, 128>}, {pipeline_mode = #tpu.pipeline_mode<synchronous>, transform_indices = @transform_6, window_bounds = array<i64: 1, 128>}, {transform_indices = @transform_7, window_bounds = array<i64: 8, 128>}]} {
    %c0 = arith.constant 0 : index
    %c0_0 = arith.constant 0 : index
    %0 = vector.load %arg1[%c0, %c0_0] : memref<8x32xf32, #tpu.memory_space<vmem>>, vector<8x32xf32>
    %1 = arith.truncf %0 : vector<8x32xf32> to vector<8x32xbf16>
    %c0_1 = arith.constant 0 : index
    %c0_2 = arith.constant 0 : index
    %2 = vector.load %arg2[%c0_1, %c0_2] : memref<32x128xbf16, #tpu.memory_space<vmem>>, vector<32x128xbf16>
    %cst = arith.constant dense<0.000000e+00> : vector<8x128xf32>
    %3 = tpu.matmul %1, %2, %cst {dimension_numbers = #tpu.dot_dimension_numbers<[1], [0], [0], [1], [0, 0, 1, 1], [], []>} : vector<8x32xbf16>, vector<32x128xbf16>, vector<8x128xf32> -> vector<8x128xf32>
    %c0_3 = arith.constant 0 : index
    %c0_4 = arith.constant 0 : index
    %4 = vector.load %arg3[%c0_3, %c0_4] : memref<1x128xf32, #tpu.memory_space<vmem>>, vector<1x128xf32>
    %5 = vector.broadcast %4 : vector<1x128xf32> to vector<8x128xf32>
    %6 = arith.addf %3, %5 : vector<8x128xf32>
    %cst_5 = arith.constant 0.000000e+00 : f32
    %7 = vector.broadcast %cst_5 : f32 to vector<8x128xf32>
    %8 = arith.maximumf %6, %7 : vector<8x128xf32>
    %9 = arith.truncf %8 : vector<8x128xf32> to vector<8x128xbf16>
    %c0_6 = arith.constant 0 : index
    %c0_7 = arith.constant 0 : index
    %10 = vector.load %arg4[%c0_6, %c0_7] : memref<128x128xbf16, #tpu.memory_space<vmem>>, vector<128x128xbf16>
    %cst_8 = arith.constant dense<0.000000e+00> : vector<8x128xf32>
    %11 = tpu.matmul %9, %10, %cst_8 {dimension_numbers = #tpu.dot_dimension_numbers<[1], [0], [0], [1], [0, 0, 1, 1], [], []>} : vector<8x128xbf16>, vector<128x128xbf16>, vector<8x128xf32> -> vector<8x128xf32>
    %c0_9 = arith.constant 0 : index
    %c0_10 = arith.constant 0 : index
    %12 = vector.load %arg5[%c0_9, %c0_10] : memref<1x128xf32, #tpu.memory_space<vmem>>, vector<1x128xf32>
    %13 = vector.broadcast %12 : vector<1x128xf32> to vector<8x128xf32>
    %14 = arith.addf %11, %13 : vector<8x128xf32>
    %cst_11 = arith.constant 0.000000e+00 : f32
    %15 = vector.broadcast %cst_11 : f32 to vector<8x128xf32>
    %16 = arith.maximumf %14, %15 : vector<8x128xf32>
    %17 = arith.truncf %16 : vector<8x128xf32> to vector<8x128xbf16>
    %c0_12 = arith.constant 0 : index
    %c0_13 = arith.constant 0 : index
    %18 = vector.load %arg6[%c0_12, %c0_13] : memref<128x128xbf16, #tpu.memory_space<vmem>>, vector<128x128xbf16>
    %cst_14 = arith.constant dense<0.000000e+00> : vector<8x128xf32>
    %19 = tpu.matmul %17, %18, %cst_14 {dimension_numbers = #tpu.dot_dimension_numbers<[1], [0], [0], [1], [0, 0, 1, 1], [], []>} : vector<8x128xbf16>, vector<128x128xbf16>, vector<8x128xf32> -> vector<8x128xf32>
    %c0_15 = arith.constant 0 : index
    %c0_16 = arith.constant 0 : index
    %20 = vector.load %arg7[%c0_15, %c0_16] : memref<1x128xf32, #tpu.memory_space<vmem>>, vector<1x128xf32>
    %21 = vector.broadcast %20 : vector<1x128xf32> to vector<8x128xf32>
    %22 = arith.addf %19, %21 : vector<8x128xf32>
    %23 = arith.truncf %22 : vector<8x128xf32> to vector<8x128xbf16>
    %c0_17 = arith.constant 0 : index
    %c0_18 = arith.constant 0 : index
    %24 = vector.load %arg8[%c0_17, %c0_18] : memref<8x128xbf16, #tpu.memory_space<vmem>>, vector<8x128xbf16>
    tpu.vector_store %arg8[%c0_17, %c0_18], %23 {strides = array<i32>} : memref<8x128xbf16, #tpu.memory_space<vmem>>, vector<8x128xbf16>,
    return
  }
  func.func @transform_0(%arg0: i32) -> (i32, i32) {
    %c0_i32 = arith.constant 0 : i32
    %c0_i32_0 = arith.constant 0 : i32
    return %arg0, %c0_i32 : i32, i32
  }
  func.func @transform_1(%arg0: i32) -> (i32, i32) {
    %c0_i32 = arith.constant 0 : i32
    %c0_i32_0 = arith.constant 0 : i32
    %c0_i32_1 = arith.constant 0 : i32
    return %c0_i32, %c0_i32_0 : i32, i32
  }
  func.func @transform_2(%arg0: i32) -> (i32, i32) {
    %c0_i32 = arith.constant 0 : i32
    %c0_i32_0 = arith.constant 0 : i32
    %c0_i32_1 = arith.constant 0 : i32
    return %c0_i32, %c0_i32_0 : i32, i32
  }
  func.func @transform_3(%arg0: i32) -> (i32, i32) {
    %c0_i32 = arith.constant 0 : i32
    %c0_i32_0 = arith.constant 0 : i32
    %c0_i32_1 = arith.constant 0 : i32
    return %c0_i32, %c0_i32_0 : i32, i32
  }
  func.func @transform_4(%arg0: i32) -> (i32, i32) {
    %c0_i32 = arith.constant 0 : i32
    %c0_i32_0 = arith.constant 0 : i32
    %c0_i32_1 = arith.constant 0 : i32
    return %c0_i32, %c0_i32_0 : i32, i32
  }
  func.func @transform_5(%arg0: i32) -> (i32, i32) {
    %c0_i32 = arith.constant 0 : i32
    %c0_i32_0 = arith.constant 0 : i32
    %c0_i32_1 = arith.constant 0 : i32
    return %c0_i32, %c0_i32_0 : i32, i32
  }
  func.func @transform_6(%arg0: i32) -> (i32, i32) {
    %c0_i32 = arith.constant 0 : i32
    %c0_i32_0 = arith.constant 0 : i32
    %c0_i32_1 = arith.constant 0 : i32
    return %c0_i32, %c0_i32_0 : i32, i32
  }
  func.func @transform_7(%arg0: i32) -> (i32, i32) {
    %c0_i32 = arith.constant 0 : i32
    %c0_i32_0 = arith.constant 0 : i32
    return %arg0, %c0_i32 : i32, i32
  }
}

</mosaic_0001>

<bundles_post_ra>
// kernel: ppo_forward.1
= control target key start
LH: loop header
LB: loop body
LE: loop exit
PB: predicated region body
PF: predicated region fallthrough
CT: control target
= control target key end

     0   :  { %12 = vsyncpa [#allocation3], 0  ;;  %s613_s0 = inlined_call_operand.hbm [shape: f32[8,32], index: 0, kind: input, shape index: {}]   ;;  %s614_s1 = inlined_call_operand.hbm [shape: bf16[32,128], index: 1, kind: input, shape index: {}]   ;;  %s615_s2 = inlined_call_operand.hbm [shape: f32[1,128], index: 2, kind: input, shape index: {}]   ;;  %s616_s3 = inlined_call_operand.hbm [shape: bf16[128,128], index: 3, kind: input, shape index: {}]   ;;  %s617_s4 = inlined_call_operand.vmem [shape: f32[1,128], index: 4, kind: input, shape index: {}]   ;;  %s618_s5 = inlined_call_operand.hbm [shape: bf16[128,128], index: 5, kind: input, shape index: {}]   ;;  %s619_s6 = inlined_call_operand.vmem [shape: f32[1,128], index: 6, kind: input, shape index: {}]   ;;  %s620_s7 = inlined_call_operand.vmem [shape: bf16[8,128], index: 7, kind: output, shape index: {}]  }
   0x1   :  { %13 = vsyncpa [#allocation5], 0  ;;  %s30_s26 = sshll.u32 %s614_s1, 4  ;;  %s31_s26 = int_to_ptr.hbm [resolvable:$true] %s30_s26 }
   0x2   :  { %14 = vsyncpa [#allocation8], 0  ;;  %s542_s27 = smov [#allocation4]   ;;  %s54_s8 = sshll.u32 %s616_s3, 4  ;;  %s55_s8 = int_to_ptr.hbm [resolvable:$true] %s54_s8 }
   0x3   :  { %s32_s28 = sshll.u32 %s542_s27, 4  ;;  %s543_s9 = smov 64   ;;  %s33_s28 = int_to_ptr.vmem [resolvable:$true] %s32_s28 }
   0x4   :  { %s544_s10 = smov 4   ;;  %s545_s11 = smov [#allocation7]  }
   0x5   :  { %38 = dma.hbm_to_vmem [thread:$0]  %s31_s26, 256, %s33_s28, [#allocation5], %s543_s9, %s543_s9, %s544_s10  }
   0x6   :  { %s56_s12 = sshll.u32 %s545_s11, 4  ;;  %s20_s15 = sshll.u32 %s613_s0, 4  ;;  %s57_s12 = int_to_ptr.vmem [resolvable:$true] %s56_s12  ;;  %s21_s15 = int_to_ptr.hbm [resolvable:$true] %s20_s15 }
   0x7   :  { %62 = dma.hbm_to_vmem [thread:$0]  %s55_s8, 1024, %s57_s12, [#allocation8], %s543_s9, %s543_s9, %s544_s10  }
   0x8   :  { %s44_s17 = sshll.u32 %s615_s2, 4  ;;  %s546_s18 = smov [#allocation2]   ;;  %s45_s17 = int_to_ptr.hbm [resolvable:$true] %s44_s17 }
   0x9   :  { %s22_s19 = sshll.u32 %s546_s18, 4  ;;  %s547_s3 = smov [#allocation6]   ;;  %s23_s19 = int_to_ptr.vmem [resolvable:$true] %s22_s19 }
   0xa   :  { %25 = dma.hbm_to_vmem [thread:$0]  %s21_s15, 128, %s23_s19, [#allocation3]  }
   0xb   :  { %s46_s20 = sshll.u32 %s547_s3, 4  ;;  %s69_s23 = sshll.u32 %s618_s5, 4  ;;  %s47_s20 = int_to_ptr.vmem [resolvable:$true] %s46_s20  ;;  %s70_s23 = int_to_ptr.hbm [resolvable:$true] %s69_s23 }
   0xc   :  { %49 = dma.hbm_to_vmem [thread:$0]  %s45_s17, 16, %s47_s20, [#allocation5]  }
   0xd   :  { %s548_s0 = smov [#allocation9]  }
   0xe   :  { %s71_s24 = sshll.u32 %s548_s0, 4  ;;  %s72_s24 = int_to_ptr.vmem [resolvable:$true] %s71_s24 }
   0xf   :  { %77 = dma.hbm_to_vmem [thread:$0]  %s70_s23, 1024, %s72_s24, [#allocation8], %s543_s9, %s543_s9, %s544_s10  }
  0x10   :  { %536 = dma.done.wait [#allocation3], 128  }
  0x11   :  { %537 = vsyncadd [#allocation3], 4294967168 }
  0x12   :  { %538 = dma.done.wait [#allocation5], 272  }
  0x13   :  { %539 = vsyncadd [#allocation5], 4294967024 }
  0x14   :  { %540 = dma.done.wait [#allocation8], 2048  }
  0x15   :  { %541 = vsyncadd [#allocation8], 4294965248  ;;  %v389_v0 = vld [vmem:[#allocation4 + $0x8] sm:$0xff]  ;;  %v388_v2 = vld [vmem:[#allocation4] sm:$0xff]  ;;  %vm123_vm0 = vcmask 261120  }
  0x16   :  { %v397_v1 = vld [vmem:[#allocation7 + $0x38] sm:$0xff]  ;;  %133 = vmatpush.bf16.msra.mxu0 %v389_v0  ;;  %v101_v3 = vld [vmem:[#allocation2] sm:$0xff]  ;;  %v396_v4 = vld [vmem:[#allocation7 + $0x30] sm:$0xff] }
  0x17   :  { %210 = vmatpush.bf16.msra.mxu1 %v397_v1  ;;  %v102_v5 = vpack.c.bf16 %v101_v3, %v101_v3  ;;  %v395_v6 = vld [vmem:[#allocation7 + $0x28] sm:$0xff]  ;;  %v394_v7 = vld [vmem:[#allocation7 + $0x20] sm:$0xff]  ;;  %v393_v8 = vld [vmem:[#allocation7 + $0x18] sm:$0xff] }
  0x18   :  { %v392_v9 = vld [vmem:[#allocation7 + $0x10] sm:$0xff]  ;;  %v391_v10 = vld [vmem:[#allocation7 + $0x8] sm:$0xff]  ;;  %v390_v11 = vld [vmem:[#allocation7] sm:$0xff] }
  0x19   :  { %v405_v12 = vld [vmem:[#allocation9 + $0x38] sm:$0xff]  ;;  %v404_v13 = vld [vmem:[#allocation9 + $0x30] sm:$0xff]  ;;  %v403_v14 = vld [vmem:[#allocation9 + $0x28] sm:$0xff] }
  0x1a   :  { %134 = vmatpush.bf16.msra.mxu0 %v388_v2  ;;  %293 = vmatpush.bf16.msra.mxu2 %v405_v12  ;;  %v402_v15 = vld [vmem:[#allocation9 + $0x20] sm:$0xff]  ;;  %v401_v16 = vld [vmem:[#allocation9 + $0x18] sm:$0xff]  ;;  %v400_v17 = vld [vmem:[#allocation9 + $0x10] sm:$0xff] }
  0x1b   :  { %211 = vmatpush.bf16.msra.mxu1 %v396_v4  ;;  %v413_v18 = vld [vmem:[#allocation6] ss:$0 sm:$0xff]  ;;  %v399_v24 = vld [vmem:[#allocation9 + $0x8] sm:$0xff]  ;;  %v398_v25 = vld [vmem:[#allocation9] sm:$0xff] }
  0x1c   :  { %v414_v26 = vld [vmem:[%s617_s4] ss:$0 sm:$0xff] }
  0x1d   :  { %323 = vmatmul.msk.bf16.vlgmr.msra.gmra.mxu0 %vm123_vm0, %v102_v5  ;;  %v415_v32 = vld [vmem:[%s619_s6] ss:$0 sm:$0xff] }
  0x1e   :  { %294 = vmatpush.bf16.msra.mxu2 %v404_v13 }
  0x1f   :  { %212 = vmatpush.bf16.msra.mxu1 %v395_v6 }
  0x22   :  { %295 = vmatpush.bf16.msra.mxu2 %v403_v14 }
  0x23   :  { %213 = vmatpush.bf16.msra.mxu1 %v394_v7 }
  0x26   :  { %296 = vmatpush.bf16.msra.mxu2 %v402_v15 }
  0x27   :  { %214 = vmatpush.bf16.msra.mxu1 %v393_v8 }
  0x2a   :  { %297 = vmatpush.bf16.msra.mxu2 %v401_v16 }
  0x2b   :  { %215 = vmatpush.bf16.msra.mxu1 %v392_v9 }
  0x2e   :  { %298 = vmatpush.bf16.msra.mxu2 %v400_v17 }
  0x2f   :  { %216 = vmatpush.bf16.msra.mxu1 %v391_v10 }
  0x32   :  { %299 = vmatpush.bf16.msra.mxu2 %v399_v24 }
  0x33   :  { %217 = vmatpush.bf16.msra.mxu1 %v390_v11 }
  0x36   :  { %300 = vmatpush.bf16.msra.mxu2 %v398_v25 }
  0x9a   :  { %v136_v19 = vpop.f32.mrf.mxu0 }
  0x9b   :  { %v137_v20 = vadd.f32 %v413_v18, %v136_v19 }
  0x9d   :  { %v140_v21 = vmax.f32 %v137_v20, 0.0 }
  0x9f   :  { %v141_v22 = vpack.c.bf16 %v140_v21, %v140_v21 }
  0xa1   :  { %218 = vmatmul.bf16.vlgmr.msra.gmra.mxu1 %v141_v22 }
  0xa2   :  { %v138_v23 = vpop.f32.mrf.mxu0 }
 0x11e   :  { %v219_v27 = vpop.f32.mrf.mxu1 }
 0x11f   :  { %v220_v28 = vadd.f32 %v414_v26, %v219_v27 }
 0x121   :  { %v223_v29 = vmax.f32 %v220_v28, 0.0 }
 0x123   :  { %v224_v30 = vpack.c.bf16 %v223_v29, %v223_v29 }
 0x125   :  { %301 = vmatmul.bf16.vlgmr.msra.gmra.mxu2 %v224_v30 }
 0x126   :  { %v221_v31 = vpop.f32.mrf.mxu1 }
 0x1a8   :  { %v302_v33 = vpop.f32.mrf.mxu2 }
 0x1a9   :  { %v303_v34 = vadd.f32 %v415_v32, %v302_v33 }
 0x1ab   :  { %v306_v35 = vpack.c.bf16 %v303_v34, %v303_v34 }
 0x1ad   :  { %307 = vst [vmem:[%s620_s7] sm:$0xf] %v306_v35 }
 0x1b0   :  { %v304_v36 = vpop.f32.mrf.mxu2 }
 0x1b1   :  { %312 = vsyncpa [#allocation3], 1 }
 0x1b2   :  { %313 = vsyncpa [#allocation5], 1 }
 0x1b3   :  { %314 = vsyncpa [#allocation8], 1 }

</bundles_post_ra>
